<compile_context>
chip_gen: v5e
topology: v5e:2x2
jax: 0.10.0
libtpu: 0.0.40
codegen_flags: <defaults>
</compile_context>

<pallas_src>
import jax
import jax.numpy as jnp
import numpy as np
from jax.experimental import pallas as pl
from jax.experimental.pallas import tpu as pltpu


def _round_up(x, m):
    return ((x + m - 1) // m) * m


# ----------------------------------------------------------------------------
# Kernel 1: fused lm_head  (dense -> GELU -> LayerNorm -> decoder matmul)
# ----------------------------------------------------------------------------
def dense_mlm_decoder_kernel(x_ref, wd_ref, bd_ref, g_ref, beta_ref,
                             wdec_ref, bdec_ref, enc_ref, mlm_ref, y_scratch):
    # Dense + GELU + LayerNorm: only once per row tile (vocab step 0).  The
    # enc output block index is constant across the vocab axis, so the buffer
    # written here stays resident and is flushed once per row tile.
    @pl.when(pl.program_id(1) == 0)
    def _():
        # bf16 x bf16 MXU matmul, f32 accumulation.
        h = jnp.dot(x_ref[...], wd_ref[...], preferred_element_type=jnp.float32)
        h = h + bd_ref[...]
        # exact GELU (torch nn.GELU default): 0.5*h*(1+erf(h/sqrt(2)))
        h = 0.5 * h * (1.0 + jax.lax.erf(h * 0.7071067811865475))
        mu = jnp.mean(h, axis=-1, keepdims=True)
        var = jnp.mean((h - mu) * (h - mu), axis=-1, keepdims=True)
        y = (h - mu) * jax.lax.rsqrt(var + 1e-5)          # rsqrt -> EUP slot
        y = y * g_ref[...] + beta_ref[...]
        enc_ref[...] = y.astype(enc_ref.dtype)            # f32 x_encoder output
        y_scratch[...] = y.astype(y_scratch.dtype)        # bf16 for decoder matmul

    # Decoder tile: [tile_n, H] x [H, tile_v] on the MXU, bf16 in / f32 acc.
    mlm_ref[...] = (
        jnp.dot(y_scratch[...], wdec_ref[...], preferred_element_type=jnp.float32)
        + bdec_ref[...]
    ).astype(mlm_ref.dtype)


def dense_mlm_decoder(x2d, wd, bd, ln_g, ln_b, wdec, bdec, *,
                      tile_n=512, tile_v=1024, logits_dtype=jnp.bfloat16,
                      vmem_limit_bytes=64 * 1024 * 1024):
    n, h = x2d.shape
    v = wdec.shape[1]
    tile_n = min(tile_n, _round_up(n, 16))
    tile_v = min(tile_v, _round_up(v, 128))
    grid = (pl.cdiv(n, tile_n), pl.cdiv(v, tile_v))

    cost = pl.CostEstimate(
        flops=2 * n * h * (h + v),
        transcendentals=n * h,
        bytes_accessed=(
            x2d.size * x2d.dtype.itemsize
            + wd.size * wd.dtype.itemsize
            + bd.size * 4 + ln_g.size * 4 + ln_b.size * 4
            + grid[0] * (wdec.size * wdec.dtype.itemsize
                         + bdec.size * bdec.dtype.itemsize)
            + n * h * 4
            + n * v * np.dtype(logits_dtype).itemsize),
    )

    return pl.pallas_call(
        dense_mlm_decoder_kernel,
        out_shape=(jax.ShapeDtypeStruct((n, h), jnp.float32),
                   jax.ShapeDtypeStruct((n, v), logits_dtype)),
        grid_spec=pltpu.PrefetchScalarGridSpec(
            num_scalar_prefetch=0,
            grid=grid,
            in_specs=[
                pl.BlockSpec((tile_n, h), lambda i, j: (i, 0)),   # x: resident across V
                pl.BlockSpec((h, h), lambda i, j: (0, 0)),        # wd: resident
                pl.BlockSpec((1, h), lambda i, j: (0, 0)),        # dense bias
                pl.BlockSpec((1, h), lambda i, j: (0, 0)),        # LN gamma
                pl.BlockSpec((1, h), lambda i, j: (0, 0)),        # LN beta
                pl.BlockSpec((h, tile_v), lambda i, j: (0, j)),   # wdec streamed over V
                pl.BlockSpec((1, tile_v), lambda i, j: (0, j)),   # decoder bias
            ],
            out_specs=[
                pl.BlockSpec((tile_n, h), lambda i, j: (i, 0)),       # x_encoder
                pl.BlockSpec((tile_n, tile_v), lambda i, j: (i, j)),  # logits
            ],
            scratch_shapes=[pltpu.VMEM((tile_n, h), jnp.bfloat16)],
        ),
        compiler_params=pltpu.CompilerParams(
            dimension_semantics=("parallel", "arbitrary"),
            vmem_limit_bytes=vmem_limit_bytes,
        ),
        cost_estimate=cost,
    )(x2d, wd, bd, ln_g, ln_b, wdec, bdec)


# ----------------------------------------------------------------------------
# Kernel 2: classifier  (fc -> LayerNorm(1e-12) -> tanh -> fc)
# ----------------------------------------------------------------------------
def classifier_kernel(x_ref, w1_ref, g_ref, beta_ref, w2_ref, o_ref):
    h = jnp.dot(x_ref[...], w1_ref[...], preferred_element_type=jnp.float32)
    mu = jnp.mean(h, axis=-1, keepdims=True)
    var = jnp.mean((h - mu) * (h - mu), axis=-1, keepdims=True)
    z = (h - mu) * jax.lax.rsqrt(var + 1e-12)
    z = jnp.tanh(z * g_ref[...] + beta_ref[...])          # tanh -> EUP slot
    o_ref[...] = jnp.dot(z.astype(w2_ref.dtype), w2_ref[...],
                         preferred_element_type=jnp.float32).astype(o_ref.dtype)


def classifier_fwd(x, w1, gamma, beta, w2, *, tile_m=256,
                   vmem_limit_bytes=64 * 1024 * 1024):
    m, h = x.shape
    c = w2.shape[1]
    # Lane-dense output: pad C up to 128 lanes, slice back afterwards.
    c_pad = max(128, _round_up(c, 128))
    if c_pad != c:
        w2 = jnp.pad(w2, ((0, 0), (0, c_pad - c)))
    tile_m = min(tile_m, _round_up(m, 16))
    m_pad = _round_up(m, tile_m)
    if m_pad != m:
        x = jnp.pad(x, ((0, m_pad - m), (0, 0)))   # pad rows -> finite garbage, sliced off
    grid = (m_pad // tile_m,)

    out_padded = pl.pallas_call(
        classifier_kernel,
        out_shape=jax.ShapeDtypeStruct((m_pad, c_pad), jnp.float32),
        grid_spec=pltpu.PrefetchScalarGridSpec(
            num_scalar_prefetch=0,
            grid=grid,
            in_specs=[
                pl.BlockSpec((tile_m, h), lambda i: (i, 0)),   # masked rows, tiled
                pl.BlockSpec((h, h), lambda i: (0, 0)),        # wc1 resident
                pl.BlockSpec((1, h), lambda i: (0, 0)),        # LN gamma
                pl.BlockSpec((1, h), lambda i: (0, 0)),        # LN beta
                pl.BlockSpec((h, c_pad), lambda i: (0, 0)),    # wc2 (padded) resident
            ],
            out_specs=pl.BlockSpec((tile_m, c_pad), lambda i: (i, 0)),
        ),
        compiler_params=pltpu.CompilerParams(
            dimension_semantics=("parallel",),
            vmem_limit_bytes=vmem_limit_bytes,
        ),
    )(x, w1, gamma, beta, w2)
    return out_padded[:m, :c]


# ----------------------------------------------------------------------------
# Forward (replicates Transformer_Pre_fc_tanh_init.forward given encoder output)
# ----------------------------------------------------------------------------
def transformer_pre_fc_tanh_init_forward(hidden_states, mlm_labels, params, *,
                                         tile_n=512, tile_v=1024, tile_m=256,
                                         logits_dtype=jnp.bfloat16):
    """hidden_states: [B,S,H] (model_base output), mlm_labels: [B,S] int.

    Returns (x_mlm [B,S,V], x_encoder_mask [M,H], x_encoder_mask_pre [M,C]).
    """
    B, S, H = hidden_states.shape
    # bf16 MXU operands (f32 accumulation inside kernels); cast once here.
    x2d = hidden_states.reshape(B * S, H).astype(jnp.bfloat16)
    wd = params["wd"].astype(jnp.bfloat16)
    wdec = params["wdec"].astype(jnp.bfloat16)

    x_encoder2d, x_mlm2d = dense_mlm_decoder(
        x2d, wd, params["bd"], params["ln_g"], params["ln_b"], wdec,
        params["bdec"], tile_n=tile_n, tile_v=tile_v, logits_dtype=logits_dtype)

    x_encoder = x_encoder2d.reshape(B, S, H)
    x_mlm = x_mlm2d.reshape(B, S, -1)

    # Host-side boolean gather (dynamic M), same semantics as torch x[mask].
    # The dead `x_mlm[bool_mlm_labels]` gather in the torch module is dropped
    # (its result is never used / returned).
    bool_mlm_labels = mlm_labels > 0
    x_encoder_mask = x_encoder[bool_mlm_labels]      # [M, H], f32

    M = x_encoder_mask.shape[0]
    C = params["wc2"].shape[1]
    if M == 0:   # guard: zero masked tokens -> no kernel call
        x_encoder_mask_pre = jnp.zeros((0, C), jnp.float32)
    else:
        x_encoder_mask_pre = classifier_fwd(
            x_encoder_mask.astype(jnp.bfloat16),
            params["wc1"].astype(jnp.bfloat16),
            params["cln_g"], params["cln_b"],
            params["wc2"].astype(jnp.bfloat16),
            tile_m=tile_m)

    return x_mlm, x_encoder_mask, x_encoder_mask_pre


if __name__ == "__main__":
    B, S, H, V, C = 2, 16, 128, 1024, 8

    key = jax.random.PRNGKey(0)
    keys = jax.random.split(key, 10)

    hidden_states = jax.random.normal(keys[0], (B, S, H), dtype=jnp.float32)
    mlm_labels = jax.random.randint(keys[1], (B, S), -2, 5, dtype=jnp.int32)
    mlm_labels = mlm_labels.at[0, 0].set(3)   # guarantee at least one masked token

    params = {
        # lm_head.dense: Linear(H,H)+bias — pre-transposed [in,out]
        "wd": jax.random.normal(keys[2], (H, H), jnp.float32) * 0.02,
        "bd": jax.random.normal(keys[3], (1, H), jnp.float32) * 0.02,
        # lm_head.layer_norm (eps=1e-5)
        "ln_g": 1.0 + 0.1 * jax.random.normal(keys[4], (1, H), jnp.float32),
        "ln_b": 0.1 * jax.random.normal(keys[5], (1, H), jnp.float32),
        # lm_head.decoder: Linear(H,V)+bias
        "wdec": jax.random.normal(keys[6], (H, V), jnp.float32) * 0.02,
        "bdec": jax.random.normal(keys[7], (1, V), jnp.float32) * 0.02,
        # classifier.classifier_fc: Linear(H,H,bias=False), init std=0.001
        "wc1": jax.random.normal(keys[8], (H, H), jnp.float32) * 0.001,
        # classifier.classifier_norm_fc: LayerNorm(H, eps=1e-12)
        "cln_g": jnp.ones((1, H), jnp.float32),
        "cln_b": jnp.zeros((1, H), jnp.float32),
        # classifier.classifier: Linear(H,C,bias=False), init std=0.001
        "wc2": jax.random.normal(keys[9], (H, C), jnp.float32) * 0.001,
    }

    # Small tiles so the demo actually exercises the multi-tile grid paths.
    x_mlm, x_enc_mask, x_enc_mask_pre = transformer_pre_fc_tanh_init_forward(
        hidden_states, mlm_labels, params, tile_n=16, tile_v=256, tile_m=16)
    jax.block_until_ready((x_mlm, x_enc_mask, x_enc_mask_pre))

    # ---- pure-JAX reference (f32) ----
    x2d_f32 = hidden_states.reshape(B * S, H)
    h_ref = x2d_f32 @ params["wd"] + params["bd"]
    h_ref = 0.5 * h_ref * (1.0 + jax.lax.erf(h_ref * 0.7071067811865475))
    mu = h_ref.mean(-1, keepdims=True)
    var = ((h_ref - mu) ** 2).mean(-1, keepdims=True)
    enc_ref = (h_ref - mu) / jnp.sqrt(var + 1e-5) * params["ln_g"] + params["ln_b"]
    logits_ref = (enc_ref @ params["wdec"] + params["bdec"]).reshape(B, S, V)
    enc_mask_ref = enc_ref.reshape(B, S, H)[mlm_labels > 0]
    h2 = x_enc_mask @ params["wc1"]
    mu2 = h2.mean(-1, keepdims=True)
    var2 = ((h2 - mu2) ** 2).mean(-1, keepdims=True)
    z_ref = jnp.tanh((h2 - mu2) / jnp.sqrt(var2 + 1e-12)
                     * params["cln_g"] + params["cln_b"])
    cls_ref = z_ref @ params["wc2"]

    assert x_mlm.shape == (B, S, V)
    assert x_enc_mask.shape[1] == H
    assert x_enc_mask_pre.shape == (x_enc_mask.shape[0], C)

    np.testing.assert_allclose(np.asarray(x_enc_mask), np.asarray(enc_mask_ref),
                               atol=7e-2, rtol=7e-2)
    np.testing.assert_allclose(np.asarray(x_mlm.astype(jnp.float32)),
                               np.asarray(logits_ref), atol=5e-2, rtol=5e-2)
    np.testing.assert_allclose(np.asarray(x_enc_mask_pre), np.asarray(cls_ref),
                               atol=5e-3, rtol=5e-2)

    print("KERNEL_OK")
</pallas_src>

<mosaic_0001>
module attributes {stable_mosaic.version = 11 : i64} {
  func.func @dense_mlm_decoder_kernel(%arg0: i32, %arg1: i32, %arg2: memref<16x128xbf16, #tpu.memory_space<vmem>>, %arg3: memref<128x128xbf16, #tpu.memory_space<vmem>>, %arg4: memref<1x128xf32, #tpu.memory_space<vmem>>, %arg5: memref<1x128xf32, #tpu.memory_space<vmem>>, %arg6: memref<1x128xf32, #tpu.memory_space<vmem>>, %arg7: memref<128x256xbf16, #tpu.memory_space<vmem>>, %arg8: memref<1x256xf32, #tpu.memory_space<vmem>>, %arg9: memref<16x128xf32, #tpu.memory_space<vmem>>, %arg10: memref<16x256xbf16, #tpu.memory_space<vmem>>, %arg11: memref<16x128xbf16, #tpu.memory_space<vmem>>) attributes {dimension_semantics = [#tpu.dimension_semantics<parallel>, #tpu.dimension_semantics<arbitrary>], iteration_bounds = array<i64: 2, 4>, scalar_prefetch = 0 : i64, scratch_operands = 1 : i64, tpu.core_type = #tpu.core_type<tc>, window_params = [{transform_indices = @transform_0, window_bounds = array<i64: 16, 128>}, {pipeline_mode = #tpu.pipeline_mode<synchronous>, transform_indices = @transform_1, window_bounds = array<i64: 128, 128>}, {pipeline_mode = #tpu.pipeline_mode<synchronous>, transform_indices = @transform_2, window_bounds = array<i64: 1, 128>}, {pipeline_mode = #tpu.pipeline_mode<synchronous>, transform_indices = @transform_3, window_bounds = array<i64: 1, 128>}, {pipeline_mode = #tpu.pipeline_mode<synchronous>, transform_indices = @transform_4, window_bounds = array<i64: 1, 128>}, {transform_indices = @transform_5, window_bounds = array<i64: 128, 256>}, {transform_indices = @transform_6, window_bounds = array<i64: 1, 256>}, {transform_indices = @transform_7, window_bounds = array<i64: 16, 128>}, {transform_indices = @transform_8, window_bounds = array<i64: 16, 256>}]} {
    %c0_i32 = arith.constant 0 : i32
    %0 = arith.cmpi eq, %arg1, %c0_i32 : i32
    %1 = arith.extui %0 : i1 to i32
    %c0_i32_0 = arith.constant 0 : i32
    %2 = arith.cmpi ne, %1, %c0_i32_0 : i32
    scf.if %2 {
      %c0_8 = arith.constant 0 : index
      %c0_9 = arith.constant 0 : index
      %11 = vector.load %arg2[%c0_8, %c0_9] : memref<16x128xbf16, #tpu.memory_space<vmem>>, vector<16x128xbf16>
      %c0_10 = arith.constant 0 : index
      %c0_11 = arith.constant 0 : index
      %12 = vector.load %arg3[%c0_10, %c0_11] : memref<128x128xbf16, #tpu.memory_space<vmem>>, vector<128x128xbf16>
      %cst_12 = arith.constant dense<0.000000e+00> : vector<16x128xf32>
      %13 = tpu.matmul %11, %12, %cst_12 {dimension_numbers = #tpu.dot_dimension_numbers<[1], [0], [0], [1], [0, 0, 1, 1], [], []>} : vector<16x128xbf16>, vector<128x128xbf16>, vector<16x128xf32> -> vector<16x128xf32>
      %c0_13 = arith.constant 0 : index
      %c0_14 = arith.constant 0 : index
      %14 = vector.load %arg4[%c0_13, %c0_14] : memref<1x128xf32, #tpu.memory_space<vmem>>, vector<1x128xf32>
      %15 = vector.broadcast %14 : vector<1x128xf32> to vector<16x128xf32>
      %16 = arith.addf %13, %15 : vector<16x128xf32>
      %cst_15 = arith.constant 5.000000e-01 : f32
      %17 = vector.broadcast %cst_15 : f32 to vector<16x128xf32>
      %18 = arith.mulf %17, %16 : vector<16x128xf32>
      %cst_16 = arith.constant 0.707106769 : f32
      %19 = vector.broadcast %cst_16 : f32 to vector<16x128xf32>
      %20 = arith.mulf %16, %19 : vector<16x128xf32>
      %21 = math.erf %20 : vector<16x128xf32>
      %cst_17 = arith.constant 1.000000e+00 : f32
      %22 = vector.broadcast %cst_17 : f32 to vector<16x128xf32>
      %23 = arith.addf %22, %21 : vector<16x128xf32>
      %24 = arith.mulf %18, %23 : vector<16x128xf32>
      %cst_18 = arith.constant dense<0.000000e+00> : vector<16xf32>
      %25 = vector.multi_reduction <add>, %24, %cst_18 [1] : vector<16x128xf32> to vector<16xf32>
      %26 = vector.shape_cast %25 : vector<16xf32> to vector<16x1xf32>
      %cst_19 = arith.constant 1.280000e+02 : f32
      %27 = vector.broadcast %cst_19 : f32 to vector<16x1xf32>
      %28 = arith.divf %26, %27 : vector<16x1xf32>
      %29 = vector.broadcast %28 : vector<16x1xf32> to vector<16x128xf32>
      %30 = arith.subf %24, %29 : vector<16x128xf32>
      %31 = vector.broadcast %28 : vector<16x1xf32> to vector<16x128xf32>
      %32 = arith.subf %24, %31 : vector<16x128xf32>
      %33 = arith.mulf %30, %32 : vector<16x128xf32>
      %cst_20 = arith.constant dense<0.000000e+00> : vector<16xf32>
      %34 = vector.multi_reduction <add>, %33, %cst_20 [1] : vector<16x128xf32> to vector<16xf32>
      %35 = vector.shape_cast %34 : vector<16xf32> to vector<16x1xf32>
      %cst_21 = arith.constant 1.280000e+02 : f32
      %36 = vector.broadcast %cst_21 : f32 to vector<16x1xf32>
      %37 = arith.divf %35, %36 : vector<16x1xf32>
      %38 = vector.broadcast %28 : vector<16x1xf32> to vector<16x128xf32>
      %39 = arith.subf %24, %38 : vector<16x128xf32>
      %cst_22 = arith.constant 9.99999974E-6 : f32
      %40 = vector.broadcast %cst_22 : f32 to vector<16x1xf32>
      %41 = arith.addf %37, %40 : vector<16x1xf32>
      %42 = math.rsqrt %41 : vector<16x1xf32>
      %43 = vector.broadcast %42 : vector<16x1xf32> to vector<16x128xf32>
      %44 = arith.mulf %39, %43 : vector<16x128xf32>
      %c0_23 = arith.constant 0 : index
      %c0_24 = arith.constant 0 : index
      %45 = vector.load %arg5[%c0_23, %c0_24] : memref<1x128xf32, #tpu.memory_space<vmem>>, vector<1x128xf32>
      %46 = vector.broadcast %45 : vector<1x128xf32> to vector<16x128xf32>
      %47 = arith.mulf %44, %46 : vector<16x128xf32>
      %c0_25 = arith.constant 0 : index
      %c0_26 = arith.constant 0 : index
      %48 = vector.load %arg6[%c0_25, %c0_26] : memref<1x128xf32, #tpu.memory_space<vmem>>, vector<1x128xf32>
      %49 = vector.broadcast %48 : vector<1x128xf32> to vector<16x128xf32>
      %50 = arith.addf %47, %49 : vector<16x128xf32>
      %c0_27 = arith.constant 0 : index
      %c0_28 = arith.constant 0 : index
      %51 = vector.load %arg9[%c0_27, %c0_28] : memref<16x128xf32, #tpu.memory_space<vmem>>, vector<16x128xf32>
      tpu.vector_store %arg9[%c0_27, %c0_28], %50 {strides = array<i32>} : memref<16x128xf32, #tpu.memory_space<vmem>>, vector<16x128xf32>,
      %52 = arith.truncf %50 : vector<16x128xf32> to vector<16x128xbf16>
      %c0_29 = arith.constant 0 : index
      %c0_30 = arith.constant 0 : index
      %53 = vector.load %arg11[%c0_29, %c0_30] : memref<16x128xbf16, #tpu.memory_space<vmem>>, vector<16x128xbf16>
      tpu.vector_store %arg11[%c0_29, %c0_30], %52 {strides = array<i32>} : memref<16x128xbf16, #tpu.memory_space<vmem>>, vector<16x128xbf16>,
    } else {
    }
    %c0 = arith.constant 0 : index
    %c0_1 = arith.constant 0 : index
    %3 = vector.load %arg11[%c0, %c0_1] : memref<16x128xbf16, #tpu.memory_space<vmem>>, vector<16x128xbf16>
    %c0_2 = arith.constant 0 : index
    %c0_3 = arith.constant 0 : index
    %4 = vector.load %arg7[%c0_2, %c0_3] : memref<128x256xbf16, #tpu.memory_space<vmem>>, vector<128x256xbf16>
    %cst = arith.constant dense<0.000000e+00> : vector<16x256xf32>
    %5 = tpu.matmul %3, %4, %cst {dimension_numbers = #tpu.dot_dimension_numbers<[1], [0], [0], [1], [0, 0, 1, 1], [], []>} : vector<16x128xbf16>, vector<128x256xbf16>, vector<16x256xf32> -> vector<16x256xf32>
    %c0_4 = arith.constant 0 : index
    %c0_5 = arith.constant 0 : index
    %6 = vector.load %arg8[%c0_4, %c0_5] : memref<1x256xf32, #tpu.memory_space<vmem>>, vector<1x256xf32>
    %7 = vector.broadcast %6 : vector<1x256xf32> to vector<16x256xf32>
    %8 = arith.addf %5, %7 : vector<16x256xf32>
    %9 = arith.truncf %8 : vector<16x256xf32> to vector<16x256xbf16>
    %c0_6 = arith.constant 0 : index
    %c0_7 = arith.constant 0 : index
    %10 = vector.load %arg10[%c0_6, %c0_7] : memref<16x256xbf16, #tpu.memory_space<vmem>>, vector<16x256xbf16>
    tpu.vector_store %arg10[%c0_6, %c0_7], %9 {strides = array<i32>} : memref<16x256xbf16, #tpu.memory_space<vmem>>, vector<16x256xbf16>,
    return
  }
  func.func @transform_0(%arg0: i32, %arg1: i32) -> (i32, i32) {
    %c0_i32 = arith.constant 0 : i32
    %c0_i32_0 = arith.constant 0 : i32
    return %arg0, %c0_i32 : i32, i32
  }
  func.func @transform_1(%arg0: i32, %arg1: i32) -> (i32, i32) {
    %c0_i32 = arith.constant 0 : i32
    %c0_i32_0 = arith.constant 0 : i32
    %c0_i32_1 = arith.constant 0 : i32
    return %c0_i32, %c0_i32_0 : i32, i32
  }
  func.func @transform_2(%arg0: i32, %arg1: i32) -> (i32, i32) {
    %c0_i32 = arith.constant 0 : i32
    %c0_i32_0 = arith.constant 0 : i32
    %c0_i32_1 = arith.constant 0 : i32
    return %c0_i32, %c0_i32_0 : i32, i32
  }
  func.func @transform_3(%arg0: i32, %arg1: i32) -> (i32, i32) {
    %c0_i32 = arith.constant 0 : i32
    %c0_i32_0 = arith.constant 0 : i32
    %c0_i32_1 = arith.constant 0 : i32
    return %c0_i32, %c0_i32_0 : i32, i32
  }
  func.func @transform_4(%arg0: i32, %arg1: i32) -> (i32, i32) {
    %c0_i32 = arith.constant 0 : i32
    %c0_i32_0 = arith.constant 0 : i32
    %c0_i32_1 = arith.constant 0 : i32
    return %c0_i32, %c0_i32_0 : i32, i32
  }
  func.func @transform_5(%arg0: i32, %arg1: i32) -> (i32, i32) {
    %c0_i32 = arith.constant 0 : i32
    %c0_i32_0 = arith.constant 0 : i32
    return %c0_i32, %arg1 : i32, i32
  }
  func.func @transform_6(%arg0: i32, %arg1: i32) -> (i32, i32) {
    %c0_i32 = arith.constant 0 : i32
    %c0_i32_0 = arith.constant 0 : i32
    return %c0_i32, %arg1 : i32, i32
  }
  func.func @transform_7(%arg0: i32, %arg1: i32) -> (i32, i32) {
    %c0_i32 = arith.constant 0 : i32
    %c0_i32_0 = arith.constant 0 : i32
    return %arg0, %c0_i32 : i32, i32
  }
  func.func @transform_8(%arg0: i32, %arg1: i32) -> (i32, i32) {
    %c0_i32 = arith.constant 0 : i32
    return %arg0, %arg1 : i32, i32
  }
}

</mosaic_0001>

<bundles_post_ra>
// kernel: tpu_custom_call.1
= control target key start
LH: loop header
LB: loop body
LE: loop exit
PB: predicated region body
PF: predicated region fallthrough
CT: control target
= control target key end

     0   :  { %s2168_s0 = inlined_call_operand.hbm [shape: bf16[32,128], index: 0, kind: input, shape index: {}]   ;;  %s2169_s1 = inlined_call_operand.hbm [shape: bf16[128,128], index: 1, kind: input, shape index: {}]   ;;  %s2170_s2 = inlined_call_operand.vmem [shape: f32[1,128], index: 2, kind: input, shape index: {}]   ;;  %s2171_s3 = inlined_call_operand.vmem [shape: f32[1,128], index: 3, kind: input, shape index: {}]   ;;  %s2172_s4 = inlined_call_operand.vmem [shape: f32[1,128], index: 4, kind: input, shape index: {}]   ;;  %s2173_s5 = inlined_call_operand.hbm [shape: bf16[128,1024], index: 5, kind: input, shape index: {}]   ;;  %s2174_s6 = inlined_call_operand.hbm [shape: f32[1,1024], index: 6, kind: input, shape index: {}]   ;;  %s2175_s7 = inlined_call_operand.hbm [shape: f32[32,128], index: 7, kind: output, shape index: {0}]   ;;  %s2176_s8 = inlined_call_operand.hbm [shape: bf16[32,1024], index: 8, kind: output, shape index: {1}]  }
   0x1   :  { %2191 = sst [smem:[#allocation31_spill]] %s2168_s0 }
   0x2   :  { %2192 = sst [smem:[#allocation32_spill]] %s2169_s1 }
   0x3   :  { %2193 = sst [smem:[#allocation33_spill]] %s2171_s3 }
   0x4   :  { %2194 = sst [smem:[#allocation34_spill]] %s2172_s4 }
   0x5   :  { %2195 = sst [smem:[#allocation35_spill]] %s2173_s5 }
   0x6   :  { %2196 = sst [smem:[#allocation36_spill]] %s2175_s7 }
   0x7   :  { %2197 = sst [smem:[#allocation37_spill]] %s2176_s8 }
   0x8   :  { %14 = vsyncpa [#allocation4], 0 }
   0x9   :  { %16 = vsyncpa [#allocation4 + $0x1], 0 }
   0xa   :  { %17 = vsyncpa [#allocation7], 0 }
   0xb   :  { %18 = vsyncpa [#allocation5], 0 }
   0xc   :  { %20 = vsyncpa [#allocation5 + $0x1], 0 }
   0xd   :  { %21 = vsyncpa [#allocation12], 0 }
   0xe   :  { %23 = vsyncpa [#allocation12 + $0x1], 0  ;;  %s1758_s27 = smov 0   ;;  %s1760_s28 = smov 0  }
   0xf   :  { %s1762_s29 = smov 0   ;;  %s1764_s30 = smov 0  }
  0x10   :  { %s1766_s9 = smov 0   ;;  %s1768_s10 = smov 0  }
  0x11   :  { %s1770_s11 = smov 0   ;;  %s1772_s12 = smov 0  }
  0x12   :  { %s1774_s13 = smov 0   ;;  %s1776_s14 = smov 0  }
  0x13   :  { %s1778_s15 = smov 0   ;;  %s1780_s16 = smov 0  }
  0x14   :  { %s1782_s17 = smov 0   ;;  %s1784_s18 = smov 0  }
  0x15 LB: > { %2198 = sst [smem:[#allocation18_spill]] %s1649_s27  ;;  %s1050_s19 = sadd.s32 4294967294, %s1701_s18   ;;  %s1701_s18 = sphi %s1784_s18, %s29_s18   ;;  %s1697_s17 = sphi %s1782_s17, %s2244_s17   ;;  %s1693_s16 = sphi %s1780_s16, %s2255_s16   ;;  %s1689_s15 = sphi %s1778_s15, %s2254_s15   ;;  %s1685_s14 = sphi %s1776_s14, %s2253_s14   ;;  %s1681_s13 = sphi %s1774_s13, %s2252_s13   ;;  %s1677_s12 = sphi %s1772_s12, %s2251_s12   ;;  %s1673_s11 = sphi %s1770_s11, %s2250_s11   ;;  %s1669_s10 = sphi %s1768_s10, %s2239_s10   ;;  %s1665_s9 = sphi %s1766_s9, %s2249_s9   ;;  %s1661_s30 = sphi %s1764_s30, %s2248_s30   ;;  %s1657_s29 = sphi %s1762_s29, %s2237_s29   ;;  %s1653_s28 = sphi %s1760_s28, %s2247_s28   ;;  %s1649_s27 = sphi %s1758_s27, %s2246_s27  }
  0x16   : > { %2199 = sst [smem:[#allocation19_spill]] %s1657_s29  ;;  %s38_s20 = sadd.s32 1, %s1693_s16 }
  0x17   : > { %2200 = sst [smem:[#allocation20_spill]] %s1669_s10  ;;  %p39_p0 = scmp.ge.s32.totalorder %s38_s20, 4 }
  0x18   : > { %2201 = sst [smem:[#allocation21_spill]] %s1681_s13  ;;  %s41_s21 = sadd.s32 1, %s1697_s17 }
  0x19   : > { %2202 = sst [smem:[#allocation22_spill]] %s1689_s15  ;;  %s48_s22 = sadd.s32 1, %s1681_s13 }
  0x1a   : > { %2203 = sst [smem:[#allocation23_spill]] %s1697_s17  ;;  %p55_p1 = scmp.ne.s32.totalorder %s1681_s13, %s1677_s12 }
  0x1b   : > { %s2257_s20 = smov (%p39_p0, %s38_s20), 0  ;;  %s2259_s21 = smov (!%p39_p0, %s41_s21), %s1697_s17 }
  0x1c   : > { %2204 = sst [smem:[#allocation24_spill]] %s2257_s20  ;;  %p56_p2 = scmp.eq.s32.totalorder %s1701_s18, 0 }
  0x1d   : > { %p61_p3 = scmp.ne.s32.totalorder %s1677_s12, %s1673_s11  ;;  %p43_p4 = scmp.ge.s32.totalorder %s2259_s21, 2 }
  0x1e   : > { %s1842_s23 = ssub.s32 %s1693_s16, %s2257_s20  ;;  %p1849_p5 = por %p56_p2, %p55_p1 }
  0x1f   : > { %p156_p6 = scmp.eq.s32.totalorder %s1842_s23, 0  ;;  %s2261_s21 = smov (%p43_p4, %s2259_s21), 0 }
  0x20   : > { %2206 = sst [smem:[#allocation25_spill]] %s2261_s21  ;;  %p227_p7 = scmp.eq.s32.totalorder %s1050_s19, 7 }
  0x21   : > { %s238_s25 = sadd.s32 1, %s1657_s29  ;;  %s45_s26 = ssub.s32 %s1697_s17, %s2261_s21 }
  0x22   : > { %p254_p8 = scmp.ne.s32.totalorder %s1653_s28, %s1649_s27  ;;  %p46_p9 = scmp.eq.s32.totalorder %s45_s26, 0 }
  0x23   : > { %p1864_p10 = por %p227_p7, %p61_p3  ;;  %s235_s8 = sor.u32 %s1842_s23, %s45_s26 }
  0x24   : > { %p1869_p11 = por %p254_p8, %p227_p7  ;;  %p236_p12 = scmp.eq.s32.totalorder %s235_s8, 0 }
  0x25   : > { %s2207_s20 = scalar_select %p1864_p10, 1, 0 }
  0x26   : > { %s2209_s7 = scalar_select %p1869_p11, 1, 0 }
  0x27   : > { %2208 = sst [smem:[#allocation26_spill]] %s2207_s20  ;;  %p1257_p13 = scmp.lt.s32.totalorder %s1701_s18, 8 }
  0x28   : > { %2210 = sst [smem:[#allocation27_spill]] %s2209_s7  ;;  %s298_s21 = sand.u32 1, %s1701_s18  }
  0x29   : > { %s1874_s15 = scalar_select %p46_p9, %s1681_s13, %s48_s22  }
  0x2a   : > { %s1877_s19 = scalar_select %p236_p12, %s1657_s29, %s238_s25  }
  0x2b   : > { %2211 = sst [smem:[#allocation28_spill]] %s1874_s15  ;;  %s300_s27 = sand.u32 1, %s1681_s13  }
  0x2c   : > { %2212 = sst [smem:[#allocation29_spill]] %s1877_s19  ;;  %s1054_s26 = sshll.u32 %s300_s27, 3 }
  0x2d   : > { %s1186_s20 = sshll.u32 %s1697_s17, 3  ;;  %s2213_s0 = sld [smem:[#allocation31_spill]] }
  0x2e   : > { %s302_s8 = scalar_lea.vmem [#allocation3], %s1054_s26  ;;  %p1240_p0 = pnand %p1257_p13, %p1849_p5 }
  0x2f   : > { %s310_s25 = sshll.u32 %s302_s8, 4  ;;  %s1890_s19 = scalar_lea.sflag [#allocation4], %s298_s21  ;;  %s311_s25 = int_to_ptr.vmem [resolvable:$true] %s310_s25 }
  0x30   : > { %s2184_s27 = smov 64   ;;  %s2185_s17 = smov 4  }
  0x31   : > { %s158_s3 = sadd.s32 1, %s1669_s10  ;;  %p165_p4 = scmp.ne.s32.totalorder %s1669_s10, %s1665_s9 }
  0x32   : > { %s1902_s4 = scalar_select %p156_p6, %s1669_s10, %s158_s3  }
  0x33   : > { %s307_s22 = scalar_lea.hbm %s2213_s0, %s1186_s20  ;;  %p167_p7 = por %p165_p4, %p56_p2 }
  0x34   : > { %s308_s15 = sshll.u32 %s307_s22, 4  ;;  %2214 = sst [smem:[#allocation30_spill]] %s1902_s4  ;;  %s309_s15 = int_to_ptr.hbm [resolvable:$true] %s308_s15 }
  0x35   : > { %1242 = dma.hbm_to_vmem [thread:$0]  (!%p1240_p0), %s309_s15, 128, %s311_s25, %s1890_s19, %s2184_s27, %s2184_s27, %s2185_s17  }
  0x36   : > { %s322_s20 = sand.u32 1, %s1669_s10   ;;  %s1187_s24 = sshll.u32 %s1693_s16, 3 }
  0x37   : > { %s1057_s21 = sshll.u32 %s322_s20, 7  ;;  %s2215_s5 = sld [smem:[#allocation35_spill]] }
  0x38   : > { %s324_s8 = scalar_lea.vmem [#allocation8], %s1057_s21  ;;  %p1913_p2 = pnand %p1257_p13, %p167_p7 }
  0x39   : > { %s332_s25 = sshll.u32 %s324_s8, 4  ;;  %s1705_s26 = smov 512   ;;  %s333_s25 = int_to_ptr.vmem [resolvable:$true] %s332_s25 }
  0x3a   : > { %s1706_s22 = smov 128   ;;  %p171_p6 = scmp.ne.s32.totalorder %s1665_s9, %s1661_s30 }
  0x3b   : > { %p248_p9 = scmp.ne.s32.totalorder %s1657_s29, %s1653_s28  ;;  %p1051_p7 = scmp.ge.s32.totalorder %s1701_s18, 1 }
  0x3c   : > { %p262_p11 = scmp.lt.s32.totalorder %s1701_s18, 9  ;;  %s2221_s1 = sld [smem:[#allocation32_spill]] }
  0x3d   : > { %s329_s15 = scalar_lea.hbm %s2215_s5, %s1187_s24  ;;  %s1707_s24 = smov 8  }
  0x3e   : > { %s330_s23 = sshll.u32 %s329_s15, 4  ;;  %s1921_s15 = sadd.s32 4294967295, %s1701_s18   ;;  %s331_s23 = int_to_ptr.hbm [resolvable:$true] %s330_s23 }
  0x3f   : > { %1245 = dma.hbm_to_vmem [thread:$0]  (!%p1913_p2), %s331_s23, 2048, %s333_s25, %s1890_s19, %s1705_s26, %s1706_s22, %s1707_s24  }
  0x40   : > { %p62_p5 = scmp.eq.s32.totalorder %s1921_s15, 0  ;;  %p221_p8 = scmp.eq.s32.totalorder %s1921_s15, 7 }
  0x41   : > { %s1060_s27 = sshll.u32 %s322_s20, 1  ;;  %s1708_s17 = smov [#allocation6]  }
  0x42   : > { %p1934_p12 = por %p62_p5, %p61_p3  ;;  %p1940_p13 = por %p171_p6, %p62_p5 }
  0x43   : > { %p1947_p0 = por %p221_p8, %p55_p1  ;;  %p1951_p4 = por %p248_p9, %p221_p8 }
  0x44   : > { %s273_s22 = sshll.u32 %s2221_s1, 4  ;;  %p1960_p3 = pnand %p1051_p7, %p262_p11  ;;  %s274_s22 = int_to_ptr.hbm [resolvable:$true] %s273_s22 }
  0x45   : > { %s275_s0 = sshll.u32 %s1708_s17, 4  ;;  %s1061_s5 = sshll.u32 %s1693_s16, 1  ;;  %s276_s0 = int_to_ptr.vmem [resolvable:$true] %s275_s0 }
  0x46   : > { %p1235_p1 = pneg %p1960_p3  ;;  %s350_s26 = scalar_lea.hbm %s2174_s6, %s1061_s5 }
  0x47   : > { %s346_s1 = scalar_lea.vmem [#allocation9], %s1060_s27  ;;  %s352_s10 = sshll.u32 %s350_s26, 4  ;;  %s353_s10 = int_to_ptr.hbm [resolvable:$true] %s352_s10 }
  0x48   : > { %p1236_p6 = pnand %p1235_p1, %p62_p5  ;;  %s354_s4 = sshll.u32 %s346_s1, 4  ;;  %s355_s4 = int_to_ptr.vmem [resolvable:$true] %s354_s4 }
  0x49   : > { %s2223_s29 = smov 4   ;;  %s2224_s7 = smov 64  }
  0x4a   : > { %1238 = dma.hbm_to_vmem [thread:$0]  (!%p1236_p6), %s274_s22, 1024, %s276_s0, [#allocation7], %s2224_s7, %s2224_s7, %s2223_s29  }
  0x4b   : > { %1248 = dma.hbm_to_vmem [thread:$0]  (!%p1913_p2), %s353_s10, 32, %s355_s4, %s1890_s19  }
  0x4c   : > { %363 = sbr.rel (%p1960_p3) target bundleno = 763 (0x2fb), region = 48  ;;  %s365_s17 = sand.u32 (!%p1960_p3), 1, %s1921_s15  }
  0x4d   : > { %s1982_s13 = sand.u32 (!%p1960_p3), 1, %s1677_s12   ;;  %s366_s5 = scalar_lea.sflag (!%p1960_p3), [#allocation4], %s365_s17 }
  0x4e   : > { %s1063_s1 = sshll.u32 (!%p1960_p3), %s1982_s13, 3 }
  0x4f   : > { %s1985_s27 = scalar_lea.vmem (!%p1960_p3), [#allocation3], %s1063_s1 }
  0x51   : > { %1628 = dma.done.wait (%p1934_p12), %s366_s5, 128  }
  0x52   : > { %1630 = vsyncadd (%p1934_p12), %s366_s5, 4294967168 }
  0x53   : > { %1632 = dma.done.wait (%p62_p5), [#allocation7], 1024  }
  0x54   : > { %1634 = vsyncadd (%p62_p5), [#allocation7], 4294966272  ;;  %s382_s0 = sand.u32 1, %s1665_s9  }
  0x55   : > { %s1065_s7 = sshll.u32 %s382_s0, 7 }
  0x56   : > { %s1996_s29 = scalar_lea.vmem [#allocation8], %s1065_s7 }
  0x57   : > { %1636 = dma.done.wait (%p1940_p13), %s366_s5, 2080  }
  0x58   : > { %1638 = vsyncadd (%p1940_p13), %s366_s5, 4294965216  ;;  %s2002_s10 = sshll.u32 %s382_s0, 1  ;;  %s1067_s19 = sshll.u32 %s1982_s13, 4 }
  0x59   : > { %s2190_s4 = sand.u32 1, %s1653_s28   ;;  %s394_s3 = scalar_lea.vmem [#allocation9], %s2002_s10 }
  0x5a   : > { %s1068_s20 = sshll.u32 %s2190_s4, 4  ;;  %s2009_s15 = scalar_lea.vmem [#allocation10], %s1067_s19 }
  0x5b   : > { %s2011_s21 = scalar_lea.vmem [#allocation11], %s1068_s20  ;;  %p1069_p11 = scmp.ne.s32.totalorder %s1685_s14, 0 }
  0x5c   : > { %s2225_s26 = sld [smem:[#allocation33_spill]] (!%p1069_p11) }
  0x5d   : > { %452 = sbr.rel (%p1069_p11) target bundleno = 586 (0x24a), region = 68  ;;  %s2226_s5 = sld [smem:[#allocation34_spill]] (!%p1069_p11) }
  0x62   : > { %v1196_v0 = vld [vmem:[#allocation6 + $0x38] sm:$0xff]  ;;  %v1195_v1 = vld [vmem:[#allocation6 + $0x30] sm:$0xff]  ;;  %v1194_v2 = vld [vmem:[#allocation6 + $0x28] sm:$0xff] }
  0x63   : > { %529 = vmatpush.bf16.msra.mxu0 %v1196_v0  ;;  %v1193_v3 = vld [vmem:[#allocation6 + $0x20] sm:$0xff]  ;;  %v1192_v4 = vld [vmem:[#allocation6 + $0x18] sm:$0xff]  ;;  %v1191_v5 = vld [vmem:[#allocation6 + $0x10] sm:$0xff] }
  0x64   : > { %v1190_v6 = vld [vmem:[#allocation6 + $0x8] sm:$0xff]  ;;  %v1189_v7 = vld [vmem:[#allocation6] sm:$0xff]  ;;  %v1188_v8 = vld [vmem:[%s1985_s27] sm:$0xff] }
  0x65   : > { %v1382_v9 = vld [vmem:[%s2170_s2] ss:$0 sm:$0xff] }
  0x67   : > { %530 = vmatpush.bf16.msra.mxu0 %v1195_v1 }
  0x6b   : > { %531 = vmatpush.bf16.msra.mxu0 %v1194_v2 }
  0x6f   : > { %532 = vmatpush.bf16.msra.mxu0 %v1193_v3 }
  0x73   : > { %533 = vmatpush.bf16.msra.mxu0 %v1192_v4 }
  0x77   : > { %534 = vmatpush.bf16.msra.mxu0 %v1191_v5 }
  0x7b   : > { %535 = vmatpush.bf16.msra.mxu0 %v1190_v6 }
  0x7f   : > { %536 = vmatpush.bf16.msra.mxu0 %v1189_v7 }
  0x82   : > { %537 = vmatmul.bf16.vlgmr.msra.gmra.mxu0 %v1188_v8 }
  0xff   : > { %v538_v10 = vpop.f32.mrf.mxu0 }
 0x100   : > { %v2018_v11 = vadd.f32 %v1382_v9, %v538_v10 }
 0x102   : > { %v545_v12 = vmul.f32 0.70710677, %v2018_v11 }
 0x104   : > { %v547_v13 = vmul.f32 %v545_v12, %v545_v12 }
 0x106   : > { %v548_v14 = vmin.f32 %v547_v13, 16.0 }
 0x107   : > { %v540_v15 = vpop.f32.mrf.mxu0 }
 0x108   : > { %v549_v16 = vmul.f32 2.1237322e-06, %v548_v14  ;;  %v2021_v17 = vadd.f32 %v1382_v9, %v540_v15  ;;  %v560_v18 = vmul.f32 3.8918573e-05, %v548_v14 }
 0x10a   : > { %v550_v19 = vadd.f32 0.00028619796, %v549_v16  ;;  %v2024_v20 = vmul.f32 0.70710677, %v2021_v17  ;;  %v561_v21 = vadd.f32 0.001143296, %v560_v18 }
 0x10c   : > { %v551_v22 = vmul.f32 %v550_v19, %v548_v14  ;;  %v587_v23 = vmul.f32 %v2024_v20, %v2024_v20  ;;  %v562_v24 = vmul.f32 %v561_v21, %v548_v14  ;;  %v543_v19 = vmul.f32 0.5, %v2018_v11 }
 0x10e   : > { %v588_v25 = vmin.f32 %v587_v23, 16.0  ;;  %v563_v26 = vadd.f32 0.014752088, %v562_v24  ;;  %v552_v27 = vadd.f32 0.0036580483, %v551_v22 }
 0x110   : > { %v589_v28 = vmul.f32 2.1237322e-06, %v588_v25  ;;  %v600_v29 = vmul.f32 3.8918573e-05, %v588_v25  ;;  %v564_v30 = vmul.f32 %v563_v26, %v548_v14  ;;  %v553_v34 = vmul.f32 %v552_v27, %v548_v14 }
 0x112   : > { %v590_v31 = vadd.f32 0.00028619796, %v589_v28  ;;  %v601_v32 = vadd.f32 0.001143296, %v600_v29  ;;  %v565_v33 = vadd.f32 0.112945676, %v564_v30 }
 0x113   : > { %v554_v41 = vadd.f32 0.05243302, %v553_v34  ;;  %v544_v28 = vmul.f32 0.5, %v2021_v17 }
 0x114   : > { %v591_v35 = vmul.f32 %v590_v31, %v588_v25  ;;  %v602_v36 = vmul.f32 %v601_v32, %v588_v25  ;;  %v566_v37 = vmul.f32 %v565_v33, %v548_v14  ;;  %v1709_v31 = vmov 128.0  }
 0x115   : > { %v555_v47 = vmul.f32 %v554_v41, %v548_v14 }
 0x116   : > { %v603_v38 = vadd.f32 0.014752088, %v602_v36  ;;  %v592_v39 = vadd.f32 0.0036580483, %v591_v35  ;;  %v567_v40 = vadd.f32 0.4994258, %v566_v37 }
 0x117   : > { %v556_v51 = vadd.f32 0.18741608, %v555_v47 }
 0x118   : > { %v604_v42 = vmul.f32 %v603_v38, %v588_v25  ;;  %v568_v43 = vmul.f32 %v567_v40, %v548_v14  ;;  %v593_v45 = vmul.f32 %v592_v39, %v588_v25 }
 0x119   : > { %v557_v56 = vmul.f32 %v556_v51, %v548_v14 }
 0x11a   : > { %v605_v44 = vadd.f32 0.112945676, %v604_v42  ;;  %v569_v46 = vadd.f32 1.0, %v568_v43  ;;  %v594_v50 = vadd.f32 0.05243302, %v593_v45 }
 0x11b   : > { %v558_v61 = vadd.f32 1.1283791, %v557_v56 }
 0x11c   : > { %v606_v48 = vmul.f32 %v605_v44, %v588_v25  ;;  %1385 = vrcp.f32 %v569_v46  ;;  %v595_v55 = vmul.f32 %v594_v50, %v588_v25  ;;  %v581_v60 = vand.u32 2147483648, %v569_v46 }
 0x11d   : > { %v579_v63 = vand.u32 2147483647, %v569_v46  ;;  %vm575_vm1 = vweird.f32 %v569_v46  ;;  %v559_v5 = vmul.f32 %v558_v61, %v545_v12 }
 0x11e   : > { %v607_v49 = vadd.f32 0.4994258, %v606_v48  ;;  %v596_v59 = vadd.f32 0.18741608, %v595_v55  ;;  %v582_v3 = vor.u32 1.1754944e-38, %v581_v60 }
 0x11f   : > { %vm580_vm3 = vcmp.eq.f32.partialorder %v579_v63, 8.507059e+37  ;;  %v1384_v60 = vld [vmem:[%s2226_s5] ss:$0 sm:$0xff] }
 0x120   : > { %v608_v52 = vmul.f32 %v607_v49, %v588_v25  ;;  %v597_v2 = vmul.f32 %v596_v59, %v588_v25 }
 0x122   : > { %v609_v53 = vadd.f32 1.0, %v608_v52  ;;  %v1386_v54 = vpop.eup %1385  ;;  %v598_v13 = vadd.f32 1.1283791, %v597_v2 }
 0x123   : > { %v571_v57 = vmul.f32 %v1386_v54, %v569_v46  ;;  %vm576_vm0 = vweird.f32 %v1386_v54 }
 0x124   : > { %1387 = vrcp.f32 %v609_v53  ;;  %vm577_vm2 = vmor %vm575_vm1, %vm576_vm0  ;;  %v621_v10 = vand.u32 2147483648, %v609_v53  ;;  %v619_v15 = vand.u32 2147483647, %v609_v53  ;;  %vm615_vm5 = vweird.f32 %v609_v53 }
 0x125   : > { %v572_v58 = vsub.f32 1.0, %v571_v57  ;;  %v599_v12 = vmul.f32 %v598_v13, %v2024_v20  ;;  %1389 = vrcp.f32 %v1709_v31  ;;  %v1383_v57 = vld [vmem:[%s2225_s26] ss:$0 sm:$0xff] }
 0x126   : > { %v622_v22 = vor.u32 1.1754944e-38, %v621_v10  ;;  %vm620_vm7 = vcmp.eq.f32.partialorder %v619_v15, 8.507059e+37 }
 0x127   : > { %v573_v62 = vmul.f32 %v1386_v54, %v572_v58 }
 0x129   : > { %v574_v1 = vadd.f32 %v1386_v54, %v573_v62 }
 0x12a   : > { %v1388_v0 = vpop.eup %1387 }
 0x12b   : > { %v611_v4 = vmul.f32 %v1388_v0, %v609_v53  ;;  %v578_v6 = vsel %vm577_vm2, %v1386_v54, %v574_v1  ;;  %vm616_vm4 = vweird.f32 %v1388_v0  ;;  %v1390_v11 = vpop.eup %1389 }
 0x12c   : > { %v583_v7 = vsel %vm580_vm3, %v582_v3, %v578_v6  ;;  %vm617_vm6 = vmor %vm615_vm5, %vm616_vm4  ;;  %v636_v32 = vmul.f32 128.0, %v1390_v11  ;;  %vm640_vm8 = vweird.f32 %v1390_v11 }
 0x12d   : > { %v612_v8 = vsub.f32 1.0, %v611_v4  ;;  %v584_v9 = vmul.f32 %v583_v7, %v559_v5 }
 0x12e   : > { %v637_v33 = vsub.f32 1.0, %v636_v32 }
 0x12f   : > { %v613_v14 = vmul.f32 %v1388_v0, %v612_v8  ;;  %v1106_v16 = vclamps-f32 %v584_v9, 1.0 }
 0x130   : > { %v638_v34 = vmul.f32 %v1390_v11, %v637_v33 }
 0x131   : > { %v614_v18 = vadd.f32 %v1388_v0, %v613_v14  ;;  %v627_v21 = vadd.f32 1.0, %v1106_v16 }
 0x132   : > { %v639_v35 = vadd.f32 %v1390_v11, %v638_v34 }
 0x133   : > { %v618_v23 = vsel %vm617_vm6, %v1388_v0, %v614_v18  ;;  %v629_v24 = vmul.f32 %v627_v21, %v543_v19 }
 0x134   : > { %v623_v25 = vsel %vm620_vm7, %v622_v22, %v618_v23  ;;  %v641_v20 = vsel %vm640_vm8, %v1390_v11, %v639_v35 }
 0x135   : > { %v624_v26 = vmul.f32 %v623_v25, %v599_v12  ;;  %631 = vadd.xlane.f32.xlu0 %v629_v24 }
 0x137   : > { %v1107_v27 = vclamps-f32 %v624_v26, 1.0 }
 0x139   : > { %v628_v29 = vadd.f32 1.0, %v1107_v27 }
 0x13b   : > { %v630_v30 = vmul.f32 %v628_v29, %v544_v28 }
 0x13d   : > { %633 = vadd.xlane.f32.xlu0 %v630_v30 }
 0x1a8   : > { %v632_v36 = vpop.xlane.xlu0 %631 }
 0x1a9   : > { %v642_v37 = vmul.f32 %v641_v20, %v632_v36 }
 0x1ab   : > { %v644_v38 = vsub.f32 %v629_v24, %v642_v37 }
 0x1ad   : > { %v646_v39 = vmul.f32 %v644_v38, %v644_v38 }
 0x1af   : > { %648 = vadd.xlane.f32.xlu1 %v646_v39 }
 0x1b0   : > { %v634_v40 = vpop.xlane.xlu0 %633 }
 0x1b1   : > { %v643_v41 = vmul.f32 %v641_v20, %v634_v40 }
 0x1b3   : > { %v645_v17 = vsub.f32 %v630_v30, %v643_v41 }
 0x1b5   : > { %v647_v42 = vmul.f32 %v645_v17, %v645_v17 }
 0x1b7   : > { %650 = vadd.xlane.f32.xlu1 %v647_v42 }
 0x222   : > { %v649_v43 = vpop.xlane.xlu1 %648 }
 0x223   : > { %v652_v44 = vmul.f32 %v649_v43, %v641_v20 }
 0x225   : > { %v654_v45 = vadd.f32 1e-05, %v652_v44 }
 0x227   : > { %1391 = vrsqrt.f32 %v654_v45  ;;  %vm662_vm10 = vweird.f32 %v654_v45 }
 0x22a   : > { %v651_v46 = vpop.xlane.xlu1 %650 }
 0x22b   : > { %v653_v47 = vmul.f32 %v651_v46, %v641_v20 }
 0x22d   : > { %v1392_v48 = vpop.eup %1391  ;;  %v655_v49 = vadd.f32 1e-05, %v653_v47 }
 0x22e   : > { %v657_v50 = vmul.f32 %v1392_v48, %v654_v45  ;;  %vm663_vm9 = vweird.f32 %v1392_v48 }
 0x22f   : > { %1393 = vrsqrt.f32 %v655_v49  ;;  %vm664_vm11 = vmor %vm662_vm10, %vm663_vm9  ;;  %vm672_vm13 = vweird.f32 %v655_v49 }
 0x230   : > { %v658_v51 = vmul.f32 %v1392_v48, %v657_v50 }
 0x232   : > { %v659_v52 = vmul.f32 0.5, %v658_v51 }
 0x234   : > { %v660_v53 = vsub.f32 1.5, %v659_v52 }
 0x235   : > { %v1394_v54 = vpop.eup %1393 }
 0x236   : > { %v661_v55 = vmul.f32 %v1392_v48, %v660_v53  ;;  %v667_v56 = vmul.f32 %v1394_v54, %v655_v49  ;;  %vm673_vm12 = vweird.f32 %v1394_v54 }
 0x237   : > { %vm674_vm14 = vmor %vm672_vm13, %vm673_vm12 }
 0x238   : > { %v665_v58 = vsel %vm664_vm11, %v1392_v48, %v661_v55  ;;  %v668_v59 = vmul.f32 %v1394_v54, %v667_v56 }
 0x239   : > { %v676_v61 = vmul.f32 %v665_v58, %v644_v38 }
 0x23a   : > { %v669_v62 = vmul.f32 0.5, %v668_v59 }
 0x23b   : > { %v682_v63 = vmul.f32 %v1383_v57, %v676_v61 }
 0x23c   : > { %v670_v0 = vsub.f32 1.5, %v669_v62 }
 0x23d   : > { %v688_v1 = vadd.f32 %v1384_v60, %v682_v63 }
 0x23e   : > { %v671_v2 = vmul.f32 %v1394_v54, %v670_v0 }
 0x23f   : > { %690 = vst [vmem:[%s2009_s15] sm:$0xff] %v688_v1 }
 0x240   : > { %v675_v3 = vsel %vm674_vm14, %v1394_v54, %v671_v2 }
 0x241   : > { %v677_v4 = vmul.f32 %v675_v3, %v645_v17 }
 0x243   : > { %v683_v5 = vmul.f32 %v1383_v57, %v677_v4 }
 0x245   : > { %v689_v6 = vadd.f32 %v1384_v60, %v683_v5 }
 0x247   : > { %691 = vst [vmem:[%s2009_s15 + $0x8] sm:$0xff] %v689_v6  ;;  %v1219_v7 = vpack.c.bf16 %v689_v6, %v688_v1 }
 0x249   : > { %1220 = vst [vmem:[#allocation2] sm:$0xff] %v1219_v7  }
 0x24a PF: > { %v1170_v8 = vld [vmem:[%s1996_s29 + $0x70] sm:$0xf]  ;;  %v1213_v9 = vld [vmem:[%s1996_s29 + $0x74] sm:$0xf0]  ;;  %v1212_v10 = vld [vmem:[%s1996_s29 + $0x74] sm:$0xf] }
 0x24b   : > { %v1171_v13 = vor.u32 %v1213_v9, %v1170_v8  ;;  %v1172_v14 = vld [vmem:[%s1996_s29 + $0x78] sm:$0xf0]  ;;  %v1162_v15 = vld [vmem:[%s1996_s29 + $0x60] sm:$0xf]  ;;  %v1211_v16 = vld [vmem:[%s1996_s29 + $0x64] sm:$0xf0] }
 0x24c   : > { %v1175_v18 = vor.u32 %v1212_v10, %v1172_v14  ;;  %v1210_v19 = vld [vmem:[%s1996_s29 + $0x64] sm:$0xf]  ;;  %v1164_v21 = vld [vmem:[%s1996_s29 + $0x68] sm:$0xf0]  ;;  %v1163_v22 = vor.u32 %v1211_v16, %v1162_v15  ;;  %v1154_v23 = vld [vmem:[%s1996_s29 + $0x50] sm:$0xf] }
 0x24d   : > { %806 = vmatpush.bf16.msra.mxu0 %v1171_v13  ;;  %v1167_v12 = vor.u32 %v1210_v19, %v1164_v21  ;;  %v1209_v24 = vld [vmem:[%s1996_s29 + $0x54] sm:$0xf0]  ;;  %v1208_v25 = vld [vmem:[%s1996_s29 + $0x54] sm:$0xf]  ;;  %v1156_v26 = vld [vmem:[%s1996_s29 + $0x58] sm:$0xf0] }
 0x24e   : > { %820 = vmatpush.bf16.msra.mxu1 %v1175_v18  ;;  %v1155_v27 = vor.u32 %v1209_v24, %v1154_v23  ;;  %v1159_v28 = vor.u32 %v1208_v25, %v1156_v26  ;;  %v1146_v29 = vld [vmem:[%s1996_s29 + $0x40] sm:$0xf]  ;;  %v1207_v30 = vld [vmem:[%s1996_s29 + $0x44] sm:$0xf0]  ;;  %v1206_v31 = vld [vmem:[%s1996_s29 + $0x44] sm:$0xf] }
 0x24f   : > { %v1148_v11 = vld [vmem:[%s1996_s29 + $0x48] sm:$0xf0]  ;;  %v1147_v32 = vor.u32 %v1207_v30, %v1146_v29  ;;  %v1138_v34 = vld [vmem:[%s1996_s29 + $0x30] sm:$0xf]  ;;  %v1205_v35 = vld [vmem:[%s1996_s29 + $0x34] sm:$0xf0] }
 0x250   : > { %v1151_v33 = vor.u32 %v1206_v31, %v1148_v11  ;;  %v1204_v20 = vld [vmem:[%s1996_s29 + $0x34] sm:$0xf]  ;;  %v1140_v36 = vld [vmem:[%s1996_s29 + $0x38] sm:$0xf0]  ;;  %v1139_v37 = vor.u32 %v1205_v35, %v1138_v34  ;;  %v1130_v39 = vld [vmem:[%s1996_s29 + $0x20] sm:$0xf] }
 0x251   : > { %807 = vmatpush.bf16.msra.mxu0 %v1163_v22  ;;  %v1143_v38 = vor.u32 %v1204_v20, %v1140_v36  ;;  %v1203_v40 = vld [vmem:[%s1996_s29 + $0x24] sm:$0xf0]  ;;  %v1202_v41 = vld [vmem:[%s1996_s29 + $0x24] sm:$0xf]  ;;  %v1132_v17 = vld [vmem:[%s1996_s29 + $0x28] sm:$0xf0] }
 0x252   : > { %821 = vmatpush.bf16.msra.mxu1 %v1167_v12  ;;  %v1131_v42 = vor.u32 %v1203_v40, %v1130_v39  ;;  %v1135_v43 = vor.u32 %v1202_v41, %v1132_v17  ;;  %v1122_v44 = vld [vmem:[%s1996_s29 + $0x10] sm:$0xf]  ;;  %v1201_v45 = vld [vmem:[%s1996_s29 + $0x14] sm:$0xf0]  ;;  %v1200_v46 = vld [vmem:[%s1996_s29 + $0x14] sm:$0xf] }
 0x253   : > { %v1124_v47 = vld [vmem:[%s1996_s29 + $0x18] sm:$0xf0]  ;;  %v1123_v48 = vor.u32 %v1201_v45, %v1122_v44  ;;  %s2227_s27 = sld [smem:[#allocation22_spill]]  ;;  %v1114_v50 = vld [vmem:[%s1996_s29] sm:$0xf]  ;;  %v1197_v56 = vld [vmem:[#allocation2] sm:$0xff] }
 0x254   : > { %v1127_v49 = vor.u32 %v1200_v46, %v1124_v47  ;;  %v1199_v51 = vld [vmem:[%s1996_s29 + $0x4] sm:$0xf0]  ;;  %v1198_v52 = vld [vmem:[%s1996_s29 + $0x4] sm:$0xf]  ;;  %v1116_v53 = vld [vmem:[%s1996_s29 + $0x8] sm:$0xf0] }
 0x255   : > { %808 = vmatpush.bf16.msra.mxu0 %v1155_v27  ;;  %v1115_v54 = vor.u32 %v1199_v51, %v1114_v50  ;;  %v1119_v55 = vor.u32 %v1198_v52, %v1116_v53  ;;  %s2228_s20 = sld [smem:[#allocation36_spill]]  ;;  %s856_s22 = sshll.u32 %s2009_s15, 4  ;;  %s857_s22 = int_to_ptr.vmem [resolvable:$true] %s856_s22 }
 0x256   : > { %822 = vmatpush.bf16.msra.mxu1 %v1159_v28  ;;  %s839_s29 = scalar_lea.sflag [#allocation5], %s1982_s13 }
 0x259   : > { %809 = vmatpush.bf16.msra.mxu0 %v1147_v32  ;;  %s1214_s0 = sshll.u32 %s2227_s27, 4 }
 0x25a   : > { %823 = vmatpush.bf16.msra.mxu1 %v1151_v33 }
 0x25b   : > { %s855_s23 = scalar_lea.hbm %s2228_s20, %s1214_s0  ;;  %s1535_s5 = scalar_lea.hbm %s2228_s20, 32 }
 0x25c   : > { %s858_s24 = sshll.u32 %s855_s23, 4  ;;  %s859_s24 = int_to_ptr.hbm [resolvable:$true] %s858_s24 }
 0x25d   : > { %810 = vmatpush.bf16.msra.mxu0 %v1139_v37  ;;  %s1529_s25 = sshra.s32 %s859_s24, 4  ;;  %s1530_s25 = int_to_ptr.hbm [resolvable:$true] %s1529_s25 }
 0x25e   : > { %824 = vmatpush.bf16.msra.mxu1 %v1143_v38  ;;  %s1531_s26 = scalar_lea.hbm %s1530_s25, 16  ;;  %p1536_p9 = scmp.lt.s32.totalorder %s1530_s25, %s2228_s20 }
 0x25f   : > { %p1532_p2 = scmp.ne.s32.totalorder %s1530_s25, %s1531_s26  ;;  %p1537_p12 = scmp.lt.s32.totalorder %s1535_s5, %s1531_s26 }
 0x261   : > { %811 = vmatpush.bf16.msra.mxu0 %v1131_v42  ;;  %p1533_p5 = pnand %p1532_p2, %p1947_p0  ;;  %p1538_p13 = por %p1537_p12, %p1536_p9 }
 0x262   : > { %825 = vmatpush.bf16.msra.mxu1 %v1135_v43 }
 0x263   : > { %p1534_p8 = pneg %p1533_p5 }
 0x265   : > { %812 = vmatpush.bf16.msra.mxu0 %v1123_v48  ;;  %p1539_p7 = pnand %p1538_p13, %p1534_p8 }
 0x266   : > { %826 = vmatpush.bf16.msra.mxu1 %v1127_v49 }
 0x269   : > { %813 = vmatpush.bf16.msra.mxu0 %v1115_v54 }
 0x26a   : > { %827 = vmatpush.bf16.msra.mxu1 %v1119_v55 }
 0x26c   : > { %814 = vmatmul.bf16.vlgmr.msra.gmra.mxu0 %v1197_v56 }
 0x26d   : > { %828 = vmatmul.bf16.vlgmr.msra.gmra.mxu1 %v1197_v56 }
 0x26e   : > { %1542 = shalt.err (!%p1539_p7)
}
 0x26f   : > { %s1710_s13 = smov 128   ;;  %s1711_s15 = smov 8   ;;  %v714_v57 = vld [vmem:[%s394_s3] sm:$0x3] }
 0x270   : > { %1231 = dma.vmem_to_hbm [thread:$0]  (%p1947_p0), %s857_s22, 256, %s859_s24, %s839_s29, %s1710_s13, %s1710_s13, %s1711_s15   ;;  %v716_v58 = vperm.slane %v714_v57, 0  ;;  %v717_v59 = vperm.slane %v714_v57, 1 }
 0x271   : > { %s1181_s7 = sshll.u32 %s1685_s14, 1  ;;  %s2229_s25 = sld [smem:[#allocation37_spill]] }
 0x272   : > { %s873_s4 = sadd.s32 %s1214_s0, %s1181_s7  ;;  %s876_s10 = sshll.u32 %s2011_s21, 4  ;;  %s877_s10 = int_to_ptr.vmem [resolvable:$true] %s876_s10 }
 0x273   : > { %s1183_s19 = sshll.u32 %s873_s4, 2  ;;  %s2230_s3 = sand.u32 1, %s1653_s28  }
 0x274   : > { %s844_s0 = scalar_lea.sflag [#allocation12], %s2230_s3 }
 0x277   : > { %s875_s26 = scalar_lea.hbm %s2229_s25, %s1183_s19  ;;  %s1563_s1 = scalar_lea.hbm %s2229_s25, 128 }
 0x278   : > { %s878_s14 = sshll.u32 %s875_s26, 4  ;;  %s879_s14 = int_to_ptr.hbm [resolvable:$true] %s878_s14 }
 0x279   : > { %s1557_s22 = sshra.s32 %s879_s14, 4  ;;  %s1558_s22 = int_to_ptr.hbm [resolvable:$true] %s1557_s22 }
 0x27a   : > { %s1559_s24 = scalar_lea.hbm %s1558_s22, 16  ;;  %p1564_p6 = scmp.lt.s32.totalorder %s1558_s22, %s2229_s25 }
 0x27b   : > { %p1560_p0 = scmp.ne.s32.totalorder %s1558_s22, %s1559_s24  ;;  %p1565_p11 = scmp.lt.s32.totalorder %s1563_s1, %s1559_s24 }
 0x27d   : > { %p1561_p3 = pnand %p1560_p0, %p1951_p4  ;;  %p1566_p2 = por %p1565_p11, %p1564_p6 }
 0x27f   : > { %p1562_p1 = pneg %p1561_p3 }
 0x281   : > { %p1567_p5 = pnand %p1566_p2, %p1562_p1 }
 0x2e9   : > { %v815_v60 = vpop.f32.mrf.mxu0 }
 0x2ea   : > { %v816_v61 = vadd.f32 %v815_v60, %v716_v58  ;;  %v829_v62 = vpop.f32.mrf.mxu1 }
 0x2eb   : > { %v830_v63 = vadd.f32 %v829_v62, %v717_v59 }
 0x2ed   : > { %v834_v0 = vpack.c.bf16 %v830_v63, %v816_v61 }
 0x2ef   : > { %836 = vst [vmem:[%s2011_s21] sm:$0xff] %v834_v0 }
 0x2f1   : > { %v817_v1 = vpop.f32.mrf.mxu0 }
 0x2f2   : > { %v818_v2 = vadd.f32 %v817_v1, %v716_v58  ;;  %v831_v3 = vpop.f32.mrf.mxu1 }
 0x2f3   : > { %v832_v4 = vadd.f32 %v831_v3, %v717_v59 }
 0x2f5   : > { %v835_v5 = vpack.c.bf16 %v832_v4, %v818_v2 }
 0x2f7   : > { %837 = vst [vmem:[%s2011_s21 + $0x8] sm:$0xff] %v835_v5 }
 0x2f8   : > { %1570 = shalt.err (!%p1567_p5)
}
 0x2f9   : > { %s1712_s21 = smov 512  }
 0x2fa   : > { %1232 = dma.vmem_to_hbm [thread:$0]  (%p1951_p4), %s877_s10, 256, %s879_s14, %s844_s0, %s1710_s13, %s1712_s21, %s1711_s15  }
 0x2fb PF: > { %p1259_p8 = scmp.ge.s32.totalorder %s1701_s18, 2  ;;  %s893_s4 = sand.u32 1, %s1673_s11  }
 0x2fc   : > { %s894_s19 = scalar_lea.sflag [#allocation5], %s893_s4 }
 0x2fd   : > { %p1250_p9 = pnand %p1259_p8, %p1864_p10 }
 0x2ff   : > { %p1251_p12 = pneg %p1250_p9 }
 0x301   : > { %1640 = dma.done.wait (%p1251_p12), %s894_s19, 256  }
 0x302   : > { %1642 = vsyncadd (%p1251_p12), %s894_s19, 4294967040  ;;  %s2232_s8 = sld [smem:[#allocation18_spill]] }
 0x303   : > { %s2233_s23 = sld [smem:[#allocation27_spill]] }
 0x308   : > { %s903_s26 = sand.u32 1, %s2232_s8  }
 0x309   : > { %p2234_p13 = scmp.ne.s32.totalorder %s2233_s23, 0  ;;  %s904_s30 = scalar_lea.sflag [#allocation12], %s903_s26 }
 0x30b   : > { %p1253_p7 = pnand %p1259_p8, %p2234_p13 }
 0x30d   : > { %p1254_p0 = pneg %p1253_p7 }
 0x30f   : > { %1644 = dma.done.wait (%p1254_p0), %s904_s30, 256  }
 0x310   : > { %1646 = vsyncadd (%p1254_p0), %s904_s30, 4294967040  ;;  %s29_s18 = sadd.s32 1, %s1701_s18   ;;  %s2236_s11 = sld [smem:[#allocation19_spill]] }
 0x311   : > { %p2121_p4 = scmp.ge.s32.totalorder %s29_s18, 10   ;;  %s2237_s29 = sld [smem:[#allocation29_spill]] }
 0x312   : > { %s2238_s15 = sld [smem:[#allocation20_spill]]  ;;  %s2246_s27 = smov %s1653_s28 }
 0x313   : > { %s2239_s10 = sld [smem:[#allocation30_spill]]  ;;  %s2248_s30 = smov %s1665_s9 }
 0x314   : > { %s2240_s14 = sld [smem:[#allocation21_spill]] }
 0x315   : > { %s2241_s3 = sld [smem:[#allocation28_spill]] }
 0x316   : > { %s2242_s0 = sld [smem:[#allocation23_spill]]  ;;  %s2247_s28 = smov %s2236_s11 }
 0x317   : > { %s2243_s22 = sld [smem:[#allocation24_spill]]  ;;  %s2250_s11 = smov %s1677_s12 }
 0x318   : > { %s2244_s17 = sld [smem:[#allocation25_spill]]  ;;  %s2249_s9 = smov %s2238_s15 }
 0x319   :  { %28 = sbr.rel (!%p2121_p4) target bundleno = 21 (0x15), region = 140 }
 0x31a   : > { %s2251_s12 = smov %s2240_s14  ;;  %s2253_s14 = smov %s1693_s16 }
 0x31b   : > { %s2252_s13 = smov %s2241_s3 }
 0x31c   : > { %s2254_s15 = smov %s2242_s0 }
 0x31d   : > { %s2255_s16 = smov %s2243_s22 }
 0x31e   :  { %910 = vsyncpa [#allocation4], 1 }
 0x31f   :  { %912 = vsyncpa [#allocation4 + $0x1], 1 }
 0x320   :  { %913 = vsyncpa [#allocation7], 1 }
 0x321   :  { %914 = vsyncpa [#allocation5], 1 }
 0x322   :  { %916 = vsyncpa [#allocation5 + $0x1], 1 }
 0x323   :  { %917 = vsyncpa [#allocation12], 1 }
 0x324   :  { %919 = vsyncpa [#allocation12 + $0x1], 1 }

</bundles_post_ra>
